<compile_context>
chip_gen: v5e
topology: v5e:2x2
jax: 0.10.0
libtpu: 0.0.40
codegen_flags: <defaults>
</compile_context>

<pallas_src>
import functools
import math

import jax
import jax.numpy as jnp
from jax.experimental import pallas as pl
from jax.experimental.pallas import tpu as pltpu


# ----------------------------------------------------------------------------
# small helpers
# ----------------------------------------------------------------------------

def _round_up(x, m):
    return ((x + m - 1) // m) * m


# ----------------------------------------------------------------------------
# Pallas kernels
# ----------------------------------------------------------------------------

def _linear_kernel(x_ref, w_ref, b_ref, o_ref, *, activation):
    # x: (TM, K) bf16   w: (K, TN) bf16   b: (1, TN) f32   o: (TM, TN)
    y = jnp.dot(x_ref[...], w_ref[...], preferred_element_type=jnp.float32)
    y = y + b_ref[...]
    if activation == "relu":
        y = jnp.maximum(y, 0.0)
    o_ref[...] = y.astype(o_ref.dtype)


def linear(x, w, b, activation=None, out_dtype=jnp.float32):
    """x: (M, K) @ w: (K, N) + b: (N,) -> (M, N); bf16 matmul, f32 accumulate."""
    M, K = x.shape
    N = w.shape[1]

    x = x.astype(jnp.bfloat16)
    w = w.astype(jnp.bfloat16)
    b = b.astype(jnp.float32).reshape(1, N)

    # N tiling: 256-wide tiles for the 256-wide MXU when possible, else 128.
    N_pad = _round_up(N, 128)
    TN = 256 if N_pad % 256 == 0 else 128
    # M tiling: 256-row tiles (pipelined, parallel grid axis).
    TM = 256 if M >= 256 else _round_up(M, 8)
    M_pad = _round_up(M, TM)

    if M_pad != M:
        x = jnp.pad(x, ((0, M_pad - M), (0, 0)))
    if N_pad != N:
        w = jnp.pad(w, ((0, 0), (0, N_pad - N)))
        b = jnp.pad(b, ((0, 0), (0, N_pad - N)))

    out = pl.pallas_call(
        functools.partial(_linear_kernel, activation=activation),
        out_shape=jax.ShapeDtypeStruct((M_pad, N_pad), out_dtype),
        grid=(M_pad // TM, N_pad // TN),
        in_specs=[
            pl.BlockSpec((TM, K), lambda i, j: (i, 0)),
            pl.BlockSpec((K, TN), lambda i, j: (0, j)),
            pl.BlockSpec((1, TN), lambda i, j: (0, j)),
        ],
        out_specs=pl.BlockSpec((TM, TN), lambda i, j: (i, j)),
        compiler_params=pltpu.CompilerParams(
            dimension_semantics=("parallel", "parallel")),
    )(x, w, b)

    if M_pad != M or N_pad != N:
        out = out[:M, :N]
    return out


def _ln_kernel(x_ref, g_ref, b_ref, o_ref, *, eps):
    x = x_ref[...].astype(jnp.float32)
    mu = jnp.mean(x, axis=-1, keepdims=True)
    var = jnp.mean((x - mu) ** 2, axis=-1, keepdims=True)
    y = (x - mu) * jax.lax.rsqrt(var + eps)
    o_ref[...] = (y * g_ref[...] + b_ref[...]).astype(o_ref.dtype)


def _add_ln_kernel(x_ref, r_ref, g_ref, b_ref, o_ref, *, eps):
    # fused residual add + layernorm
    x = x_ref[...].astype(jnp.float32) + r_ref[...].astype(jnp.float32)
    mu = jnp.mean(x, axis=-1, keepdims=True)
    var = jnp.mean((x - mu) ** 2, axis=-1, keepdims=True)
    y = (x - mu) * jax.lax.rsqrt(var + eps)
    o_ref[...] = (y * g_ref[...] + b_ref[...]).astype(o_ref.dtype)


def layernorm(x, gamma, beta, residual=None, eps=1e-5):
    """LayerNorm over last dim of (M, D); optionally fuses `x + residual`."""
    M, D = x.shape
    TM = 512 if M >= 512 else _round_up(M, 8)
    M_pad = _round_up(M, TM)
    pad = M_pad - M

    x = x.astype(jnp.float32)
    if pad:
        x = jnp.pad(x, ((0, pad), (0, 0)))
    g = gamma.astype(jnp.float32).reshape(1, D)
    b = beta.astype(jnp.float32).reshape(1, D)
    cp = pltpu.CompilerParams(dimension_semantics=("parallel",))

    if residual is None:
        out = pl.pallas_call(
            functools.partial(_ln_kernel, eps=eps),
            out_shape=jax.ShapeDtypeStruct((M_pad, D), jnp.float32),
            grid=(M_pad // TM,),
            in_specs=[
                pl.BlockSpec((TM, D), lambda i: (i, 0)),
                pl.BlockSpec((1, D), lambda i: (0, 0)),
                pl.BlockSpec((1, D), lambda i: (0, 0)),
            ],
            out_specs=pl.BlockSpec((TM, D), lambda i: (i, 0)),
            compiler_params=cp,
        )(x, g, b)
    else:
        r = residual.astype(jnp.float32)
        if pad:
            r = jnp.pad(r, ((0, pad), (0, 0)))
        out = pl.pallas_call(
            functools.partial(_add_ln_kernel, eps=eps),
            out_shape=jax.ShapeDtypeStruct((M_pad, D), jnp.float32),
            grid=(M_pad // TM,),
            in_specs=[
                pl.BlockSpec((TM, D), lambda i: (i, 0)),
                pl.BlockSpec((TM, D), lambda i: (i, 0)),
                pl.BlockSpec((1, D), lambda i: (0, 0)),
                pl.BlockSpec((1, D), lambda i: (0, 0)),
            ],
            out_specs=pl.BlockSpec((TM, D), lambda i: (i, 0)),
            compiler_params=cp,
        )(x, r, g, b)

    if pad:
        out = out[:M]
    return out


def _mha_kernel(q_ref, k_ref, v_ref, am_ref, kpm_ref, o_ref, *, num_heads, scale):
    # One batch element per grid step; all heads computed here.
    # q: (1, Sq, D) bf16   k/v: (1, Sk, D) bf16
    # am: (Sq, Sk) f32 additive (shared across batch)
    # kpm: (1, 1, Sk) f32 additive key-padding bias for this batch element
    q = q_ref[0] * scale                    # fold softmax scale into Q
    k = k_ref[0]
    v = v_ref[0]
    bias = am_ref[...] + kpm_ref[0]         # (Sq, Sk) f32
    D = q.shape[-1]
    Dh = D // num_heads

    outs = []
    for h in range(num_heads):
        lo, hi = h * Dh, (h + 1) * Dh
        qh = q[:, lo:hi]
        kh = k[:, lo:hi]
        vh = v[:, lo:hi]
        # contract on the Dh axis directly (no explicit k transpose)
        s = jax.lax.dot_general(qh, kh, (((1,), (1,)), ((), ())),
                                preferred_element_type=jnp.float32)
        s = s + bias
        s = s - jnp.max(s, axis=-1, keepdims=True)
        p = jnp.exp(s)
        inv = pl.reciprocal(jnp.sum(p, axis=-1, keepdims=True), approx=True)
        p = (p * inv).astype(vh.dtype)
        outs.append(jnp.dot(p, vh, preferred_element_type=jnp.float32))

    # one lane-dense (Sq, D) store per grid step
    o_ref[0] = jnp.concatenate(outs, axis=-1).astype(o_ref.dtype)


def attention(q, k, v, num_heads, attn_mask, key_padding_mask):
    """q: (B, Sq, D), k/v: (B, Sk, D) -> (B, Sq, D) bf16 (pre out-projection)."""
    B, Sq, D = q.shape
    Sk = k.shape[1]
    Dh = D // num_heads
    scale = 1.0 / math.sqrt(Dh)

    if attn_mask is None:
        am = jnp.zeros((Sq, Sk), jnp.float32)
    else:
        am = attn_mask.astype(jnp.float32)
    if key_padding_mask is None:
        kpm = jnp.zeros((B, 1, Sk), jnp.float32)
    else:
        # finite large-negative instead of -inf guards fully-masked rows
        kpm = jnp.where(key_padding_mask, -1e30, 0.0).astype(
            jnp.float32).reshape(B, 1, Sk)

    return pl.pallas_call(
        functools.partial(_mha_kernel, num_heads=num_heads, scale=scale),
        out_shape=jax.ShapeDtypeStruct((B, Sq, D), jnp.bfloat16),
        grid=(B,),
        in_specs=[
            pl.BlockSpec((1, Sq, D), lambda b: (b, 0, 0)),
            pl.BlockSpec((1, Sk, D), lambda b: (b, 0, 0)),
            pl.BlockSpec((1, Sk, D), lambda b: (b, 0, 0)),
            pl.BlockSpec((Sq, Sk), lambda b: (0, 0)),
            pl.BlockSpec((1, 1, Sk), lambda b: (b, 0, 0)),
        ],
        out_specs=pl.BlockSpec((1, Sq, D), lambda b: (b, 0, 0)),
        compiler_params=pltpu.CompilerParams(
            dimension_semantics=("parallel",)),
    )(q.astype(jnp.bfloat16), k.astype(jnp.bfloat16), v.astype(jnp.bfloat16),
      am, kpm)


# ----------------------------------------------------------------------------
# Transformer building blocks (orchestration in JAX, compute in Pallas)
# ----------------------------------------------------------------------------

def self_attention(x, p, num_heads, attn_mask=None, key_padding_mask=None):
    B, S, D = x.shape
    x2d = x.reshape(B * S, D)
    # fused Q|K|V projection: one kernel launch, one activation read
    qkv = linear(x2d, p["wqkv"], p["bqkv"], out_dtype=jnp.bfloat16)
    q = qkv[:, :D].reshape(B, S, D)
    k = qkv[:, D:2 * D].reshape(B, S, D)
    v = qkv[:, 2 * D:].reshape(B, S, D)
    o = attention(q, k, v, num_heads, attn_mask, key_padding_mask)
    o2d = linear(o.reshape(B * S, D), p["wo"], p["bo"])
    return o2d.reshape(B, S, D)


def cross_attention(x, memory, p, num_heads):
    B, Sq, D = x.shape
    Sk = memory.shape[1]
    q = linear(x.reshape(B * Sq, D), p["wq"], p["bq"],
               out_dtype=jnp.bfloat16).reshape(B, Sq, D)
    kv = linear(memory.reshape(B * Sk, D), p["wkv"], p["bkv"],
                out_dtype=jnp.bfloat16)
    k = kv[:, :D].reshape(B, Sk, D)
    v = kv[:, D:].reshape(B, Sk, D)
    o = attention(q, k, v, num_heads, None, None)
    o2d = linear(o.reshape(B * Sq, D), p["wo"], p["bo"])
    return o2d.reshape(B, Sq, D)


def feed_forward(x2d, p):
    h = linear(x2d, p["w1"], p["b1"], activation="relu",
               out_dtype=jnp.bfloat16)
    return linear(h, p["w2"], p["b2"])


def encoder_layer(x, p, num_heads, src_key_padding_mask):
    # post-LN (norm_first=False), ReLU activation, eval-mode dropout = identity
    B, S, D = x.shape
    a = self_attention(x, p["self_attn"], num_heads,
                       key_padding_mask=src_key_padding_mask)
    x2d = layernorm(x.reshape(B * S, D), p["ln1_g"], p["ln1_b"],
                    residual=a.reshape(B * S, D))
    f = feed_forward(x2d, p["ffn"])
    x2d = layernorm(x2d, p["ln2_g"], p["ln2_b"], residual=f)
    return x2d.reshape(B, S, D)


def decoder_layer(x, memory, p, num_heads, tgt_mask, tgt_key_padding_mask):
    B, T, D = x.shape
    a = self_attention(x, p["self_attn"], num_heads,
                       attn_mask=tgt_mask,
                       key_padding_mask=tgt_key_padding_mask)
    x2d = layernorm(x.reshape(B * T, D), p["ln1_g"], p["ln1_b"],
                    residual=a.reshape(B * T, D))
    x = x2d.reshape(B, T, D)
    c = cross_attention(x, memory, p["cross_attn"], num_heads)
    x2d = layernorm(x2d, p["ln2_g"], p["ln2_b"], residual=c.reshape(B * T, D))
    f = feed_forward(x2d, p["ffn"])
    x2d = layernorm(x2d, p["ln3_g"], p["ln3_b"], residual=f)
    return x2d.reshape(B, T, D)


def sinusoidal_pe(max_len, d_model):
    pos = jnp.arange(max_len, dtype=jnp.float32)[:, None]
    div = jnp.exp(jnp.arange(0, d_model, 2, dtype=jnp.float32)
                  * (-math.log(10000.0) / d_model))
    pe = jnp.zeros((max_len, d_model), jnp.float32)
    pe = pe.at[:, 0::2].set(jnp.sin(pos * div))
    pe = pe.at[:, 1::2].set(jnp.cos(pos * div))
    return pe


def barline_s2s_forward(params, src, tgt, tgt_mask=None,
                        src_key_padding_mask=None, tgt_key_padding_mask=None):
    """
    src: (B, S_src) int32 token ids
    tgt: (B, S_tgt) int32 token ids
    returns logits: (B, S_tgt, vocab_size)
    """
    H = params["num_heads"]
    D = params["embed_size"]
    B, S_src = src.shape
    _, S_tgt = tgt.shape

    # embedding + positional encoding (gather / table build = glue)
    # TODO(synk): embedding gather done with jnp.take (no gather kernel here).
    src_e = jnp.take(params["embedding"], src, axis=0) + params["pe"][:S_src][None]
    tgt_e = jnp.take(params["embedding"], tgt, axis=0) + params["pe"][:S_tgt][None]

    # encoder
    mem = src_e
    for lp in params["encoder_layers"]:
        mem = encoder_layer(mem, lp, H, src_key_padding_mask)
    mem = layernorm(mem.reshape(B * S_src, D),
                    params["enc_norm_g"], params["enc_norm_b"]).reshape(B, S_src, D)

    # decoder
    out = tgt_e
    for lp in params["decoder_layers"]:
        out = decoder_layer(out, mem, lp, H, tgt_mask, tgt_key_padding_mask)
    out = layernorm(out.reshape(B * S_tgt, D),
                    params["dec_norm_g"], params["dec_norm_b"])

    # final vocab projection (N padded to a lane multiple inside linear())
    logits = linear(out, params["fc_w"], params["fc_b"])
    return logits.reshape(B, S_tgt, params["vocab_size"])


# ----------------------------------------------------------------------------
# Deterministic parameter construction (synthetic weights)
# ----------------------------------------------------------------------------

def init_params(key, vocab_size, embed_size, num_heads, num_layers,
                dim_feedforward=2048, max_len=5000, bias_init=None):
    keys = iter(jax.random.split(key, 4096))

    def w(shape, scale=0.02):
        return jax.random.normal(next(keys), shape, jnp.float32) * scale

    bf16 = lambda a: a.astype(jnp.bfloat16)   # matmul weights stored in bf16
    zeros = lambda s: jnp.zeros(s, jnp.float32)
    ones = lambda s: jnp.ones(s, jnp.float32)
    D, F = embed_size, dim_feedforward

    def self_attn_params():
        wq, wk, wv = w((D, D)), w((D, D)), w((D, D))
        return dict(wqkv=bf16(jnp.concatenate([wq, wk, wv], axis=1)),
                    bqkv=zeros((3 * D,)),
                    wo=bf16(w((D, D))), bo=zeros((D,)))

    def cross_attn_params():
        wq, wk, wv = w((D, D)), w((D, D)), w((D, D))
        return dict(wq=bf16(wq), bq=zeros((D,)),
                    wkv=bf16(jnp.concatenate([wk, wv], axis=1)),
                    bkv=zeros((2 * D,)),
                    wo=bf16(w((D, D))), bo=zeros((D,)))

    def ffn_params():
        return dict(w1=bf16(w((D, F))), b1=zeros((F,)),
                    w2=bf16(w((F, D))), b2=zeros((D,)))

    enc_layers, dec_layers = [], []
    for _ in range(num_layers):
        enc_layers.append(dict(self_attn=self_attn_params(), ffn=ffn_params(),
                               ln1_g=ones((D,)), ln1_b=zeros((D,)),
                               ln2_g=ones((D,)), ln2_b=zeros((D,))))
    for _ in range(num_layers):
        dec_layers.append(dict(self_attn=self_attn_params(),
                               cross_attn=cross_attn_params(),
                               ffn=ffn_params(),
                               ln1_g=ones((D,)), ln1_b=zeros((D,)),
                               ln2_g=ones((D,)), ln2_b=zeros((D,)),
                               ln3_g=ones((D,)), ln3_b=zeros((D,))))

    fc_b = zeros((vocab_size,)) if bias_init is None else jnp.asarray(
        bias_init, jnp.float32)

    return dict(
        vocab_size=vocab_size, embed_size=embed_size, num_heads=num_heads,
        embedding=w((vocab_size, D), scale=1.0),
        pe=sinusoidal_pe(max_len, D),
        encoder_layers=enc_layers, decoder_layers=dec_layers,
        enc_norm_g=ones((D,)), enc_norm_b=zeros((D,)),
        dec_norm_g=ones((D,)), dec_norm_b=zeros((D,)),
        fc_w=bf16(w((D, vocab_size))), fc_b=fc_b,
    )


def causal_mask(T):
    # float additive mask like nn.Transformer.generate_square_subsequent_mask
    return jnp.where(jnp.triu(jnp.ones((T, T), bool), k=1), -jnp.inf, 0.0)


# ----------------------------------------------------------------------------

if __name__ == "__main__":
    VOCAB, EMBED, HEADS, LAYERS = 64, 32, 4, 2
    B, S_SRC, S_TGT = 2, 8, 8

    root = jax.random.PRNGKey(0)
    pkey, skey, tkey = jax.random.split(root, 3)

    params = init_params(pkey, VOCAB, EMBED, HEADS, LAYERS,
                         dim_feedforward=2048, max_len=64)

    src = jax.random.randint(skey, (B, S_SRC), 0, VOCAB, dtype=jnp.int32)
    tgt = jax.random.randint(tkey, (B, S_TGT), 0, VOCAB, dtype=jnp.int32)
    tgt_mask = causal_mask(S_TGT)

    logits = barline_s2s_forward(params, src, tgt, tgt_mask=tgt_mask)
    jax.block_until_ready(logits)

    assert logits.shape == (B, S_TGT, VOCAB), logits.shape
    assert bool(jnp.all(jnp.isfinite(logits)))
    print("KERNEL_OK")
</pallas_src>

<mosaic_0001>
module attributes {stable_mosaic.version = 11 : i64} {
  func.func @_linear_kernel(%arg0: i32, %arg1: i32, %arg2: memref<16x32xbf16, #tpu.memory_space<vmem>>, %arg3: memref<32x128xbf16, #tpu.memory_space<vmem>>, %arg4: memref<1x128xf32, #tpu.memory_space<vmem>>, %arg5: memref<16x128xbf16, #tpu.memory_space<vmem>>) attributes {dimension_semantics = [#tpu.dimension_semantics<parallel>, #tpu.dimension_semantics<parallel>], iteration_bounds = array<i64: 1, 1>, scalar_prefetch = 0 : i64, scratch_operands = 0 : i64, tpu.core_type = #tpu.core_type<tc>, window_params = [{transform_indices = @transform_0, window_bounds = array<i64: 16, 32>}, {transform_indices = @transform_1, window_bounds = array<i64: 32, 128>}, {transform_indices = @transform_2, window_bounds = array<i64: 1, 128>}, {transform_indices = @transform_3, window_bounds = array<i64: 16, 128>}]} {
    %c0 = arith.constant 0 : index
    %c0_0 = arith.constant 0 : index
    %0 = vector.load %arg2[%c0, %c0_0] : memref<16x32xbf16, #tpu.memory_space<vmem>>, vector<16x32xbf16>
    %c0_1 = arith.constant 0 : index
    %c0_2 = arith.constant 0 : index
    %1 = vector.load %arg3[%c0_1, %c0_2] : memref<32x128xbf16, #tpu.memory_space<vmem>>, vector<32x128xbf16>
    %cst = arith.constant dense<0.000000e+00> : vector<16x128xf32>
    %2 = tpu.matmul %0, %1, %cst {dimension_numbers = #tpu.dot_dimension_numbers<[1], [0], [0], [1], [0, 0, 1, 1], [], []>} : vector<16x32xbf16>, vector<32x128xbf16>, vector<16x128xf32> -> vector<16x128xf32>
    %c0_3 = arith.constant 0 : index
    %c0_4 = arith.constant 0 : index
    %3 = vector.load %arg4[%c0_3, %c0_4] : memref<1x128xf32, #tpu.memory_space<vmem>>, vector<1x128xf32>
    %4 = vector.broadcast %3 : vector<1x128xf32> to vector<16x128xf32>
    %5 = arith.addf %2, %4 : vector<16x128xf32>
    %6 = arith.truncf %5 : vector<16x128xf32> to vector<16x128xbf16>
    %c0_5 = arith.constant 0 : index
    %c0_6 = arith.constant 0 : index
    %7 = vector.load %arg5[%c0_5, %c0_6] : memref<16x128xbf16, #tpu.memory_space<vmem>>, vector<16x128xbf16>
    tpu.vector_store %arg5[%c0_5, %c0_6], %6 {strides = array<i32>} : memref<16x128xbf16, #tpu.memory_space<vmem>>, vector<16x128xbf16>,
    return
  }
  func.func @transform_0(%arg0: i32, %arg1: i32) -> (i32, i32) {
    %c0_i32 = arith.constant 0 : i32
    %c0_i32_0 = arith.constant 0 : i32
    return %arg0, %c0_i32 : i32, i32
  }
  func.func @transform_1(%arg0: i32, %arg1: i32) -> (i32, i32) {
    %c0_i32 = arith.constant 0 : i32
    %c0_i32_0 = arith.constant 0 : i32
    return %c0_i32, %arg1 : i32, i32
  }
  func.func @transform_2(%arg0: i32, %arg1: i32) -> (i32, i32) {
    %c0_i32 = arith.constant 0 : i32
    %c0_i32_0 = arith.constant 0 : i32
    return %c0_i32, %arg1 : i32, i32
  }
  func.func @transform_3(%arg0: i32, %arg1: i32) -> (i32, i32) {
    %c0_i32 = arith.constant 0 : i32
    return %arg0, %arg1 : i32, i32
  }
}

</mosaic_0001>

<bundles_post_ra>
// kernel: tpu_custom_call.1
= control target key start
LH: loop header
LB: loop body
LE: loop exit
PB: predicated region body
PF: predicated region fallthrough
CT: control target
= control target key end

     0   :  { %8 = vsyncpa [#allocation3], 0  ;;  %s268_s0 = inlined_call_operand.hbm [shape: bf16[16,32], index: 0, kind: input, shape index: {}]   ;;  %s269_s1 = inlined_call_operand.hbm [shape: bf16[32,128], index: 1, kind: input, shape index: {}]   ;;  %s270_s2 = inlined_call_operand.vmem [shape: f32[1,128], index: 2, kind: input, shape index: {}]   ;;  %s271_s3 = inlined_call_operand.hbm [shape: bf16[16,128], index: 3, kind: output, shape index: {}]  }
   0x1   :  { %9 = vsyncpa [#allocation6], 0 }
   0x2   :  { %10 = vsyncpa [#allocation4], 0  ;;  %s15_s14 = sshll.u32 %s268_s0, 4  ;;  %s222_s15 = smov [#allocation2]   ;;  %s16_s14 = int_to_ptr.hbm [resolvable:$true] %s15_s14 }
   0x3   :  { %s17_s16 = sshll.u32 %s222_s15, 4  ;;  %s28_s19 = sshll.u32 %s269_s1, 4  ;;  %s18_s16 = int_to_ptr.vmem [resolvable:$true] %s17_s16  ;;  %s29_s19 = int_to_ptr.hbm [resolvable:$true] %s28_s19 }
   0x4   :  { %s223_s20 = smov 64   ;;  %s224_s21 = smov 4  }
   0x5   :  { %23 = dma.hbm_to_vmem [thread:$0]  %s16_s14, 128, %s18_s16, [#allocation3], %s223_s20, %s223_s20, %s224_s21  }
   0x6   :  { %s225_s22 = smov [#allocation5]  }
   0x7   :  { %s30_s23 = sshll.u32 %s225_s22, 4  ;;  %s31_s23 = int_to_ptr.vmem [resolvable:$true] %s30_s23 }
   0x8   :  { %36 = dma.hbm_to_vmem [thread:$0]  %s29_s19, 256, %s31_s23, [#allocation6], %s223_s20, %s223_s20, %s224_s21  }
   0x9   :  { %216 = dma.done.wait [#allocation3], 128  }
   0xa   :  { %217 = vsyncadd [#allocation3], 4294967168 }
   0xb   :  { %218 = dma.done.wait [#allocation6], 256  }
   0xc   :  { %219 = vsyncadd [#allocation6], 4294967040  ;;  %v132_v0 = vld [vmem:[#allocation5 + $0x8] sm:$0xff]  ;;  %v131_v1 = vld [vmem:[#allocation5] sm:$0xff]  ;;  %vm75_vm0 = vcmask 261120   ;;  %s226_s24 = smov [#allocation7]  }
   0xd   :  { %85 = vmatpush.bf16.msra.mxu0 %v132_v0  ;;  %v130_v2 = vld [vmem:[#allocation2] sm:$0xff]  ;;  %s101_s25 = sshll.u32 %s226_s24, 4  ;;  %s103_s28 = sshll.u32 %s271_s3, 4  ;;  %s102_s25 = int_to_ptr.vmem [resolvable:$true] %s101_s25  ;;  %s104_s28 = int_to_ptr.hbm [resolvable:$true] %s103_s28 }
   0xe   :  { %v143_v4 = vld [vmem:[%s270_s2] ss:$0 sm:$0xff] }
  0x11   :  { %86 = vmatpush.bf16.msra.mxu0 %v131_v1 }
  0x14   :  { %129 = vmatmul.msk.bf16.vlgmr.msra.gmra.mxu0 %vm75_vm0, %v130_v2 }
  0x91   :  { %v88_v3 = vpop.f32.mrf.mxu0 }
  0x92   :  { %v89_v6 = vadd.f32 %v143_v4, %v88_v3 }
  0x99   :  { %v90_v5 = vpop.f32.mrf.mxu0 }
  0x9a   :  { %v91_v7 = vadd.f32 %v143_v4, %v90_v5 }
  0x9c   :  { %v136_v8 = vpack.c.bf16 %v91_v7, %v89_v6 }
  0x9e   :  { %137 = vst [vmem:[#allocation7] sm:$0xff] %v136_v8  }
  0x9f   :  { %109 = dma.vmem_to_hbm [thread:$0]  %s102_s25, 128, %s104_s28, [#allocation4], %s223_s20, %s223_s20, %s224_s21  }
  0xa0   :  { %220 = dma.done.wait [#allocation4], 128  }
  0xa1   :  { %221 = vsyncadd [#allocation4], 4294967168 }
  0xa2   :  { %114 = vsyncpa [#allocation3], 1 }
  0xa3   :  { %115 = vsyncpa [#allocation6], 1 }
  0xa4   :  { %116 = vsyncpa [#allocation4], 1 }

</bundles_post_ra>
